<compile_context>
chip_gen: v6e
topology: v6e:2x2x1
jax: 0.10.0
libtpu: 0.0.40
codegen_flags: <defaults>
</compile_context>

<pallas_src>
import math

import jax
import jax.numpy as jnp
from jax.experimental import pallas as pl
from jax.experimental.pallas import tpu as pltpu

SHIFT = math.log(2.0)  # ShiftedSoftplus shift


def _round_up(x: int, m: int) -> int:
    return ((x + m - 1) // m) * m


def _make_update_u_kernel(num_graphs: int):
    """lin1 -> shifted softplus -> segment-sum (lin2 hoisted to the wrapper)."""

    def kernel(v_ref, batch_ref, w1_ref, b1_ref, acc_ref):
        i = pl.program_id(1)  # node-tile (reduction) axis

        @pl.when(i == 0)
        def _init():
            acc_ref[...] = jnp.zeros_like(acc_ref)

        vt = v_ref[...]                                        # [H, TN] bf16
        # lin1 in transposed orientation: [h2, H] @ [H, TN] -> [h2, TN] (MXU)
        h = jnp.dot(w1_ref[...], vt, preferred_element_type=jnp.float32)
        h = h + b1_ref[...]                                    # b1 is [h2, 1]
        # ShiftedSoftplus on a lane-dense [h2, TN] tile (exp/log -> EUP)
        h = jax.nn.softplus(h) - jnp.float32(SHIFT)

        # Scatter-add over nodes into graphs via one-hot matmul, contracting
        # the node (lane) axis.  Padded columns carry id == num_graphs, so
        # their one-hot column is all zero and they contribute nothing.
        seg = batch_ref[...]                                   # [1, TN] int32
        gids = jax.lax.broadcasted_iota(
            jnp.int32, (num_graphs, seg.shape[1]), 0)          # [B, TN]
        onehot = (seg == gids).astype(jnp.float32)             # [B, TN]
        acc_ref[...] += jax.lax.dot_general(
            onehot, h, dimension_numbers=(((1,), (1,)), ((), ())),
            preferred_element_type=jnp.float32)                # [B, h2]

    return kernel


def update_u_pallas(v, batch, w1, b1, w2, b2, num_graphs, *,
                    tile_n=None, num_splits=1):
    """Pallas implementation of update_u.forward(v, batch).

    Weights are in PyTorch nn.Linear layout: w1 [h2, hidden], w2 [out, h2],
    biases 1-D.  num_splits: optional leading grid axis producing per-core
    partials (use 2 on v7x; keep 1 on single-core v5e/v6e).
    """
    n, hidden = v.shape
    h2 = w1.shape[0]
    out_c = w2.shape[0]

    if tile_n is None:
        # Large lane-major node tiles; multiple of 128 (ids live in lanes).
        tile_n = min(4096, _round_up(max(pl.cdiv(n, num_splits), 1), 128))
    tile_n = _round_up(tile_n, 128)

    n_pad = _round_up(max(n, 1), tile_n * num_splits)
    steps = n_pad // (tile_n * num_splits)
    pad = n_pad - n

    # Nodes-in-lanes layout: v_t [hidden, N_pad] bf16 (halves the dominant HBM
    # stream); graph ids as a contiguous [1, N_pad] int32 row.  Padded tail
    # columns get an out-of-range id so they drop out of the scatter.
    v_t = jnp.pad(v.astype(jnp.bfloat16), ((0, pad), (0, 0))).T
    batch_row = jnp.pad(batch.astype(jnp.int32), ((0, pad),),
                        constant_values=num_graphs).reshape(1, n_pad)

    w1_bf = w1.astype(jnp.bfloat16)                    # [h2, hidden], resident
    b1_col = b1.reshape(h2, 1).astype(jnp.float32)     # column -> lane broadcast

    node = lambda c, i: (0, c * steps + i)   # streamed node tiles (lane axis)
    const = lambda c, i: (0, 0)              # resident weights/bias

    partials = pl.pallas_call(
        _make_update_u_kernel(num_graphs),
        out_shape=jax.ShapeDtypeStruct((num_splits, num_graphs, h2),
                                       jnp.float32),
        grid=(num_splits, steps),
        in_specs=[
            pl.BlockSpec((hidden, tile_n), node),   # v_t (bf16), double-buffered
            pl.BlockSpec((1, tile_n), node),        # graph ids, lane-major
            pl.BlockSpec((h2, hidden), const),      # w1 (bf16), VMEM-resident
            pl.BlockSpec((h2, 1), const),           # b1, VMEM-resident
        ],
        # One resident accumulator block per split, revisited across the node
        # (reduction) axis.
        out_specs=pl.BlockSpec((None, num_graphs, h2), lambda c, i: (c, 0, 0)),
        compiler_params=pltpu.CompilerParams(
            # split axis writes disjoint output blocks -> "parallel";
            # node axis accumulates into the resident output -> "arbitrary".
            dimension_semantics=("parallel", "arbitrary"),
            # Explicit scoped-VMEM budget (v5e default is only 16 MiB; safe on
            # v7x's 64 MiB physical).  Lane-dense tiles keep usage ~1-2 MiB.
            vmem_limit_bytes=32 * 1024 * 1024,
        ),
    )(v_t, batch_row, w1_bf, b1_col)

    acc = partials.sum(axis=0)                               # [B, h2] f32

    # Hoisted lin2 + folded bias: lin2 is linear, so it commutes with the
    # segment-sum.  Counts cost one tiny pass over the ids in the wrapper.
    counts = jax.ops.segment_sum(jnp.ones((n,), jnp.float32),
                                 batch.astype(jnp.int32),
                                 num_segments=num_graphs)    # [B]
    u = jnp.dot(acc, w2.astype(jnp.float32).T,
                precision=jax.lax.Precision.HIGHEST)          # [B, out_c]
    u = u + counts[:, None] * b2.reshape(1, out_c).astype(jnp.float32)
    return u


def xavier_uniform(key, fan_out, fan_in):
    # torch.nn.init.xavier_uniform_ on a [out, in] weight: U(-a, a),
    # a = sqrt(6 / (fan_in + fan_out))
    a = math.sqrt(6.0 / (fan_in + fan_out))
    return jax.random.uniform(key, (fan_out, fan_in), jnp.float32, -a, a)


def update_u_reference(v, batch, w1, b1, w2, b2, num_graphs):
    # Pure-JAX reference matching the kernel's streaming precision
    # (v and w1 read as bf16; everything else in f32).
    vf = v.astype(jnp.bfloat16).astype(jnp.float32)
    w1f = w1.astype(jnp.bfloat16).astype(jnp.float32)
    h = jnp.dot(vf, w1f.T, precision=jax.lax.Precision.HIGHEST) + b1.reshape(1, -1)
    h = jax.nn.softplus(h) - SHIFT
    y = jnp.dot(h, w2.T, precision=jax.lax.Precision.HIGHEST) + b2.reshape(1, -1)
    return jax.ops.segment_sum(y, batch, num_segments=num_graphs)


if __name__ == "__main__":
    hidden_channels = 32
    out_channels = 8
    n_nodes = 300          # > tile_n -> exercises multi-step accumulation
    num_graphs = 2

    key = jax.random.PRNGKey(0)
    k_v, k_w1, k_b1, k_w2, k_b2 = jax.random.split(key, 5)

    v = jax.random.normal(k_v, (n_nodes, hidden_channels), jnp.float32)
    # sorted graph ids, standard PyG-style batching
    batch = jnp.concatenate([jnp.zeros((140,), jnp.int32),
                             jnp.ones((n_nodes - 140,), jnp.int32)])

    h2 = hidden_channels // 2
    # reset_parameters() uses xavier_uniform weights and zero biases; we use
    # small nonzero biases so the kernel's bias paths are actually exercised.
    w1 = xavier_uniform(k_w1, h2, hidden_channels)           # [h2, hidden]
    b1 = 0.1 * jax.random.normal(k_b1, (h2,), jnp.float32)
    w2 = xavier_uniform(k_w2, out_channels, h2)               # [out, h2]
    b2 = 0.1 * jax.random.normal(k_b2, (out_channels,), jnp.float32)

    u = update_u_pallas(v, batch, w1, b1, w2, b2, num_graphs,
                        tile_n=128, num_splits=1)
    u = jax.block_until_ready(u)

    u_ref = update_u_reference(v, batch, w1, b1, w2, b2, num_graphs)
    assert jnp.allclose(u, u_ref, atol=1e-3, rtol=1e-3), (u, u_ref)
    print("KERNEL_OK")
</pallas_src>

<mosaic_0001>
module attributes {stable_mosaic.version = 11 : i64} {
  func.func @kernel(%arg0: i32, %arg1: i32, %arg2: memref<32x128xbf16, #tpu.memory_space<vmem>>, %arg3: memref<1x128xi32, #tpu.memory_space<vmem>>, %arg4: memref<16x32xbf16, #tpu.memory_space<vmem>>, %arg5: memref<16x1xf32, #tpu.memory_space<vmem>>, %arg6: memref<1x2x16xf32, #tpu.memory_space<vmem>>) attributes {dimension_semantics = [#tpu.dimension_semantics<parallel>, #tpu.dimension_semantics<arbitrary>], iteration_bounds = array<i64: 1, 3>, scalar_prefetch = 0 : i64, scratch_operands = 0 : i64, tpu.core_type = #tpu.core_type<tc>, window_params = [{transform_indices = @transform_0, window_bounds = array<i64: 32, 128>}, {transform_indices = @transform_1, window_bounds = array<i64: 1, 128>}, {pipeline_mode = #tpu.pipeline_mode<synchronous>, transform_indices = @transform_2, window_bounds = array<i64: 16, 32>}, {pipeline_mode = #tpu.pipeline_mode<synchronous>, transform_indices = @transform_3, window_bounds = array<i64: 16, 1>}, {transform_indices = @transform_4, window_bounds = array<i64: 1, 2, 16>}]} {
    %c0_i32 = arith.constant 0 : i32
    %0 = arith.cmpi eq, %arg1, %c0_i32 : i32
    %1 = arith.extui %0 : i1 to i32
    %c0_i32_0 = arith.constant 0 : i32
    %2 = arith.cmpi ne, %1, %c0_i32_0 : i32
    scf.if %2 {
      %cst_18 = arith.constant 0.000000e+00 : f32
      %38 = vector.broadcast %cst_18 : f32 to vector<2x16xf32>
      %c0_19 = arith.constant 0 : index
      %c0_20 = arith.constant 0 : index
      %c0_21 = arith.constant 0 : index
      %39 = vector.load %arg6[%c0_19, %c0_20, %c0_21] : memref<1x2x16xf32, #tpu.memory_space<vmem>>, vector<1x2x16xf32>
      %40 = vector.shape_cast %39 : vector<1x2x16xf32> to vector<2x16xf32>
      %41 = vector.shape_cast %38 : vector<2x16xf32> to vector<1x2x16xf32>
      tpu.vector_store %arg6[%c0_19, %c0_20, %c0_21], %41 {strides = array<i32>} : memref<1x2x16xf32, #tpu.memory_space<vmem>>, vector<1x2x16xf32>,
    } else {
    }
    %c0 = arith.constant 0 : index
    %c0_1 = arith.constant 0 : index
    %3 = vector.load %arg2[%c0, %c0_1] : memref<32x128xbf16, #tpu.memory_space<vmem>>, vector<32x128xbf16>
    %c0_2 = arith.constant 0 : index
    %c0_3 = arith.constant 0 : index
    %4 = vector.load %arg4[%c0_2, %c0_3] : memref<16x32xbf16, #tpu.memory_space<vmem>>, vector<16x32xbf16>
    %cst = arith.constant dense<0.000000e+00> : vector<16x128xf32>
    %5 = tpu.matmul %4, %3, %cst {dimension_numbers = #tpu.dot_dimension_numbers<[1], [0], [0], [1], [0, 0, 1, 1], [], []>} : vector<16x32xbf16>, vector<32x128xbf16>, vector<16x128xf32> -> vector<16x128xf32>
    %c0_4 = arith.constant 0 : index
    %c0_5 = arith.constant 0 : index
    %6 = vector.load %arg5[%c0_4, %c0_5] : memref<16x1xf32, #tpu.memory_space<vmem>>, vector<16x1xf32>
    %7 = vector.broadcast %6 : vector<16x1xf32> to vector<16x128xf32>
    %8 = arith.addf %5, %7 : vector<16x128xf32>
    %cst_6 = arith.constant 0.000000e+00 : f32
    %9 = vector.broadcast %cst_6 : f32 to vector<16x128xf32>
    %10 = arith.maximumf %8, %9 : vector<16x128xf32>
    %11 = vector.broadcast %cst_6 : f32 to vector<16x128xf32>
    %12 = arith.subf %8, %11 : vector<16x128xf32>
    %13 = arith.cmpf one, %12, %12 : vector<16x128xf32>
    %14 = vector.broadcast %cst_6 : f32 to vector<16x128xf32>
    %15 = arith.addf %8, %14 : vector<16x128xf32>
    %16 = math.absf %12 : vector<16x128xf32>
    %cst_7 = arith.constant 0.000000e+00 : f32
    %17 = vector.broadcast %cst_7 : f32 to vector<16x128xf32>
    %18 = arith.subf %17, %16 : vector<16x128xf32>
    %19 = math.exp %18 : vector<16x128xf32>
    %20 = math.log1p %19 : vector<16x128xf32>
    %21 = arith.addf %10, %20 : vector<16x128xf32>
    %22 = arith.select %13, %15, %21 : vector<16x128xi1>, vector<16x128xf32>
    %cst_8 = arith.constant 0.693147182 : f32
    %23 = vector.broadcast %cst_8 : f32 to vector<16x128xf32>
    %24 = arith.subf %22, %23 : vector<16x128xf32>
    %c0_9 = arith.constant 0 : index
    %c0_10 = arith.constant 0 : index
    %25 = vector.load %arg3[%c0_9, %c0_10] : memref<1x128xi32, #tpu.memory_space<vmem>>, vector<1x128xi32>
    %26 = tpu.iota {dimensions = array<i32: 0>} : vector<2x128xi32>
    %27 = vector.broadcast %25 : vector<1x128xi32> to vector<2x128xi32>
    %28 = arith.cmpi eq, %27, %26 : vector<2x128xi32>
    %29 = arith.extui %28 : vector<2x128xi1> to vector<2x128xi32>
    %30 = arith.sitofp %29 : vector<2x128xi32> to vector<2x128xf32>
    %c0_11 = arith.constant 0 : index
    %c0_12 = arith.constant 0 : index
    %c0_13 = arith.constant 0 : index
    %31 = vector.load %arg6[%c0_11, %c0_12, %c0_13] : memref<1x2x16xf32, #tpu.memory_space<vmem>>, vector<1x2x16xf32>
    %32 = vector.shape_cast %31 : vector<1x2x16xf32> to vector<2x16xf32>
    %cst_14 = arith.constant dense<0.000000e+00> : vector<2x16xf32>
    %33 = tpu.matmul %30, %24, %cst_14 {dimension_numbers = #tpu.dot_dimension_numbers<[1], [1], [0], [0], [0, 0, 1, 0], [], []>} : vector<2x128xf32>, vector<16x128xf32>, vector<2x16xf32> -> vector<2x16xf32>
    %34 = arith.addf %32, %33 : vector<2x16xf32>
    %c0_15 = arith.constant 0 : index
    %c0_16 = arith.constant 0 : index
    %c0_17 = arith.constant 0 : index
    %35 = vector.load %arg6[%c0_15, %c0_16, %c0_17] : memref<1x2x16xf32, #tpu.memory_space<vmem>>, vector<1x2x16xf32>
    %36 = vector.shape_cast %35 : vector<1x2x16xf32> to vector<2x16xf32>
    %37 = vector.shape_cast %34 : vector<2x16xf32> to vector<1x2x16xf32>
    tpu.vector_store %arg6[%c0_15, %c0_16, %c0_17], %37 {strides = array<i32>} : memref<1x2x16xf32, #tpu.memory_space<vmem>>, vector<1x2x16xf32>,
    return
  }
  func.func @transform_0(%arg0: i32, %arg1: i32) -> (i32, i32) {
    %c3_i32 = arith.constant 3 : i32
    %0 = arith.muli %arg0, %c3_i32 : i32
    %1 = arith.addi %0, %arg1 : i32
    %c0_i32 = arith.constant 0 : i32
    %c0_i32_0 = arith.constant 0 : i32
    return %c0_i32, %1 : i32, i32
  }
  func.func @transform_1(%arg0: i32, %arg1: i32) -> (i32, i32) {
    %c3_i32 = arith.constant 3 : i32
    %0 = arith.muli %arg0, %c3_i32 : i32
    %1 = arith.addi %0, %arg1 : i32
    %c0_i32 = arith.constant 0 : i32
    %c0_i32_0 = arith.constant 0 : i32
    return %c0_i32, %1 : i32, i32
  }
  func.func @transform_2(%arg0: i32, %arg1: i32) -> (i32, i32) {
    %c0_i32 = arith.constant 0 : i32
    %c0_i32_0 = arith.constant 0 : i32
    %c0_i32_1 = arith.constant 0 : i32
    return %c0_i32, %c0_i32_0 : i32, i32
  }
  func.func @transform_3(%arg0: i32, %arg1: i32) -> (i32, i32) {
    %c0_i32 = arith.constant 0 : i32
    %c0_i32_0 = arith.constant 0 : i32
    %c0_i32_1 = arith.constant 0 : i32
    return %c0_i32, %c0_i32_0 : i32, i32
  }
  func.func @transform_4(%arg0: i32, %arg1: i32) -> (i32, i32, i32) {
    %c0_i32 = arith.constant 0 : i32
    %c0_i32_0 = arith.constant 0 : i32
    %c0_i32_1 = arith.constant 0 : i32
    return %arg0, %c0_i32, %c0_i32_0 : i32, i32, i32
  }
}

</mosaic_0001>

<bundles_post_ra>
// kernel: tpu_custom_call.1
= control target key start
LH: loop header
LB: loop body
LE: loop exit
PB: predicated region body
PF: predicated region fallthrough
CT: control target
= control target key end

     0   :  { %9 = vsyncpa [#allocation3], 0  ;;  %s954_s0 = inlined_call_operand.hbm [shape: bf16[32,384], index: 0, kind: input, shape index: {}]   ;;  %s955_s1 = inlined_call_operand.vmem [shape: s32[1,384], index: 1, kind: input, shape index: {}]   ;;  %s956_s2 = inlined_call_operand.vmem [shape: bf16[16,32], index: 2, kind: input, shape index: {}]   ;;  %s957_s3 = inlined_call_operand.vmem [shape: f32[16,1], index: 3, kind: input, shape index: {}]   ;;  %s958_s4 = inlined_call_operand.hbm [shape: f32[1,2,16], index: 4, kind: output, shape index: {}]  }
   0x1   :  { %11 = vsyncpa [#allocation3 + $0x1], 0 }
   0x2   :  { %12 = vsyncpa [#allocation4], 0  ;;  %s813_s15 = smov 0   ;;  %s815_s16 = smov 0  }
   0x3   :  { %s817_s17 = smov 0   ;;  %s819_s18 = smov 0  }
   0x4   :  { %s821_s19 = smov 0   ;;  %s823_s20 = smov 0  }
   0x5 LB: > { %s546_s21 = sadd.s32 4294967295, %s776_s20   ;;  %s27_s22 = sadd.s32 1, %s772_s19  ;;  %s776_s20 = sphi %s823_s20, %s18_s20   ;;  %s772_s19 = sphi %s821_s19, %s967_s19   ;;  %s768_s18 = sphi %s819_s18, %s966_s18   ;;  %s764_s17 = sphi %s817_s17, %s965_s17   ;;  %s760_s16 = sphi %s815_s16, %s964_s16   ;;  %s756_s15 = sphi %s813_s15, %s963_s15  }
   0x6   : > { %p28_p0 = scmp.ge.s32.totalorder %s27_s22, 3  ;;  %s41_s23 = sadd.s32 1, %s764_s17 }
   0x7   : > { %p48_p1 = scmp.ne.s32.totalorder %s764_s17, %s760_s16  ;;  %p49_p2 = scmp.eq.s32.totalorder %s776_s20, 0 }
   0x8   : > { %s969_s22 = smov (%p28_p0, %s27_s22), 0  ;;  %p54_p4 = scmp.ne.s32.totalorder %s760_s16, %s756_s15 }
   0x9   : > { %p849_p3 = por %p49_p2, %p48_p1  ;;  %s38_s25 = ssub.s32 %s772_s19, %s969_s22 }
   0xa   : > { %p55_p5 = scmp.eq.s32.totalorder %s546_s21, 0  ;;  %p39_p6 = scmp.eq.s32.totalorder %s38_s25, 0 }
   0xb   : > { %p598_p8 = scmp.lt.s32.totalorder %s776_s20, 3  ;;  %s182_s28 = sand.u32 1, %s764_s17  }
   0xc   : > { %p858_p7 = por %p55_p5, %p54_p4  ;;  %s550_s29 = sshll.u32 %s772_s19, 6 }
   0xd   : > { %s864_s27 = scalar_select %p39_p6, %s764_s17, %s41_s23  }
   0xe   : > { %s549_s30 = sshll.u32 %s182_s28, 4  ;;  %s193_s7 = scalar_lea.hbm %s954_s0, %s550_s29 }
   0xf   : > { %s186_s8 = scalar_lea.vmem [#allocation2], %s549_s30  ;;  %p873_p9 = pnand %p598_p8, %p849_p3 }
  0x10   : > { %s194_s9 = sshll.u32 %s186_s8, 4  ;;  %p551_p10 = scmp.ge.s32.totalorder %s776_s20, 1  ;;  %s195_s9 = int_to_ptr.vmem [resolvable:$true] %s194_s9 }
  0x11   : > { %s183_s11 = scalar_lea.sflag [#allocation3], %s182_s28  ;;  %p672_p11 = pneg %p873_p9 }
  0x12   : > { %s683_s12 = scalar_lea.vmem %s195_s9, 256  ;;  %s778_s13 = smov [#allocation2]  }
  0x13   : > { %p684_p12 = scmp.ne.s32.totalorder %s195_s9, %s683_s12  ;;  %s688_s14 = sshll.u32 %s778_s13, 4  ;;  %s689_s14 = int_to_ptr.vmem [resolvable:$false] %s688_s14 }
  0x14   : > { %s690_s15 = scalar_lea.vmem %s689_s14, 512  ;;  %p691_p1 = scmp.lt.s32.totalorder %s195_s9, %s689_s14 }
  0x15   : > { %p686_p13 = pnand %p684_p12, %p672_p11  ;;  %p692_p2 = scmp.lt.s32.totalorder %s690_s15, %s683_s12 }
  0x17   : > { %p687_p0 = pneg %p686_p13  ;;  %p693_p3 = por %p692_p2, %p691_p1 }
  0x19   : > { %p694_p4 = pnand %p693_p3, %p687_p0 }
  0x1b   : > { %697 = shalt.err (!%p694_p4)
}
  0x1c   : > { %s779_s23 = smov 192   ;;  %s780_s24 = smov 64  }
  0x1d   : > { %s781_s25 = smov 4   ;;  %p212_p5 = scmp.lt.s32.totalorder %s776_s20, 4 }
  0x1e   : > { %597 = dma.hbm_to_vmem [thread:$0]  (!%p873_p9), %s193_s7, 256, %s195_s9, %s183_s11, %s779_s23, %s780_s24, %s781_s25  }
  0x1f   : > { %p213_p6 = pnand %p551_p10, %p212_p5 }
  0x20   : > { %s218_s28 = sand.u32 (!%p213_p6), 1, %s760_s16  }
  0x21   : > { %216 = sbr.rel (%p213_p6) target bundleno = 508 (0x1fc), region = 36  ;;  %s552_s29 = sshll.u32 (!%p213_p6), %s218_s28, 4 }
  0x22   : > { %s219_s30 = scalar_lea.sflag (!%p213_p6), [#allocation3], %s218_s28  ;;  %s222_s5 = scalar_lea.vmem (!%p213_p6), [#allocation2], %s552_s29 }
  0x26   : > { %747 = dma.done.wait (%p858_p7), %s219_s30, 256  }
  0x27   : > { %749 = vsyncadd (%p858_p7), %s219_s30, 4294967040  ;;  %p251_p8 = scmp.lt.s32.totalorder %s768_s18, 2  ;;  %p553_p9 = scmp.ne.s32.totalorder %s768_s18, 0 }
  0x29   : > { %s892_s6 = scalar_select %p251_p8, %s768_s18, 2 }
  0x2a   : > { %260 = sbr.rel (%p553_p9) target bundleno = 49 (0x31), region = 44 }
  0x2b   : > { %s253_s9 = scalar_lea.vmem %s955_s1, %s892_s6 }
  0x2f   : > { %vm261_vm0 = vcmask 123904   ;;  %v782_v0 = vmov 0.0  }
  0x30   : > { %262 = vst.msk [vmem:[#allocation5] sm:$0x3] %vm261_vm0, %v782_v0 }
  0x31 PF: > { %v659_v1 = vld [vmem:[%s222_s5 + $0x8] sm:$0xff]   ;;  %v783_v2 = vmov 0.0   ;;  %v660_v3 = vld [vmem:[%s222_s5] sm:$0xff]   ;;  %vm784_vm1 = vmmov 0   ;;  %v785_v5 = vmov 0   ;;  %vm298_vm2 = vcmask 261120  }
  0x32   : > { %573 = vmatprep.subr.bf16.mxu0 %v783_v2  ;;  %581 = vmatprep.subr.mxu1 %v783_v2  ;;  %v270_v4 = vld [vmem:[%s957_s3 + $0x8] sm:$0xff]  ;;  %v661_v6 = vld [vmem:[%s956_s2] sm:$0xff]   ;;  %v382_v44 = vlaneseq  ;;  %v786_v51 = vmov 1.0   ;;  %s787_s23 = smov [#allocation5]   ;;  %vm463_vm8 = vcmask 123904   ;;  %p921_p7 = scmp.eq.s32.totalorder %s546_s21, 2 }
  0x33   : > { %574 = vmatpush3.bf16.msra.mxu0 %v659_v1  ;;  %577 = vmatprep.mubr.msk.bf16.mxu0 %vm784_vm1, %v783_v2  ;;  %v269_v7 = vld [vmem:[%s957_s3] sm:$0xff]  ;;  %s474_s24 = sshll.u32 %s787_s23, 4  ;;  %s475_s24 = int_to_ptr.vmem [resolvable:$true] %s474_s24 }
  0x34   : > { %575 = vmatprep.subr.bf16.mxu0 %v783_v2  ;;  %585 = vmatprep.mubr.msk.f32.mxu1 %vm784_vm1, %v783_v2  ;;  %v383_v48 = vshrl.u32 %v382_v44, 7  ;;  %v560_v49 = vld [vmem:[%s253_s9] ss:$0 sm:$0xff]  ;;  %s698_s28 = scalar_lea.vmem %s475_s24, 32  ;;  %p705_p13 = scmp.lt.s32.totalorder %s475_s24, %s475_s24 }
  0x35   : > { %658 = vset.pattern.permute.xlu0 %v785_v5  ;;  %p699_p10 = scmp.ne.s32.totalorder %s475_s24, %s698_s28  ;;  %p706_p0 = scmp.lt.s32.totalorder %s698_s28, %s698_s28 }
  0x36   : > { %278 = vperm.xlu0 %658, %v270_v4   ;;  %vm388_vm7 = vcmp.eq.s32.totalorder %v560_v49, %v383_v48 }
  0x37   : > { %576 = vmatpush3.bf16.msra.mxu0 %v660_v3  ;;  %v391_v52 = vld [vmem:[#allocation5] sm:$0x3]  ;;  %p700_p11 = pnand %p699_p10, %p921_p7  ;;  %p707_p1 = por %p706_p0, %p705_p13 }
  0x39   : > { %p701_p12 = pneg %p700_p11 }
  0x3a   : > { %578 = vmatmul.mubr.msk.bf16.vlgmr.msra.gmra.mxu0 %vm298_vm2, %v661_v6  ;;  %273 = vperm.xlu0 %658, %v269_v7  }
  0x3b   : > { %p708_p2 = pnand %p707_p1, %p701_p12 }
  0xb1   : > { %v279_v8 = vpop.permute.xlu0 %278 }
  0xb5   : > { %v274_v9 = vpop.permute.xlu0 %273 }
  0xfa   : > { %v336_v10 = vpop.f32.mrf.mxu0 }
  0xfb   : > { %v337_v11 = vadd.f32 %v336_v10, %v274_v9 }
  0xfc   : > { %v579_v12 = vpop.f32.mrf.mxu0 }
  0xfd   : > { %v349_v13 = vand.u32 2147483647, %v337_v11  ;;  %v343_v39 = vmax.f32 %v337_v11, 0.0  ;;  %vm345_vm6 = vcmp.ne.f32.partialorder %v337_v11, %v337_v11 }
  0xfe   : > { %v339_v14 = vpop.f32.mrf.mxu0 }
  0xff   : > { %v351_v15 = vsub.f32 0.0, %v349_v13  ;;  %v340_v16 = vadd.f32 %v339_v14, %v279_v8 }
 0x100   : > { %v580_v17 = vpop.f32.mrf.mxu0 }
 0x101   : > { %v353_v18 = vmul.f32 1.442695, %v351_v15  ;;  %v350_v19 = vand.u32 2147483647, %v340_v16  ;;  %v344_v40 = vmax.f32 %v340_v16, 0.0  ;;  %vm346_vm5 = vcmp.ne.f32.partialorder %v340_v16, %v340_v16 }
 0x103   : > { %662 = vpow2.f32 %v353_v18  ;;  %v352_v20 = vsub.f32 0.0, %v350_v19 }
 0x105   : > { %v355_v21 = vmul.f32 1.442695, %v352_v20 }
 0x107   : > { %664 = vpow2.f32 %v355_v21 }
 0x110   : > { %v663_v22 = vpop.eup %662 }
 0x111   : > { %v357_v23 = vadd.f32 1.0, %v663_v22  ;;  %v360_v26 = vmul.f32 -0.5, %v663_v22  ;;  %v363_v30 = vand.u32 2147483647, %v663_v22 }
 0x113   : > { %666 = vlog2.f32 %v357_v23  ;;  %v361_v28 = vadd.f32 1.0, %v360_v26  ;;  %vm364_vm3 = vcmp.lt.f32.partialorder %v363_v30, 0.0004427343 }
 0x114   : > { %v665_v24 = vpop.eup %664 }
 0x115   : > { %v366_v25 = vadd.f32 1.0, %v665_v24  ;;  %v369_v27 = vmul.f32 -0.5, %v665_v24  ;;  %v372_v33 = vand.u32 2147483647, %v665_v24  ;;  %v362_v34 = vmul.f32 %v663_v22, %v361_v28 }
 0x117   : > { %668 = vlog2.f32 %v366_v25  ;;  %v370_v31 = vadd.f32 1.0, %v369_v27  ;;  %vm373_vm4 = vcmp.lt.f32.partialorder %v372_v33, 0.0004427343 }
 0x119   : > { %v371_v37 = vmul.f32 %v665_v24, %v370_v31 }
 0x120   : > { %v667_v29 = vpop.eup %666 }
 0x121   : > { %v359_v32 = vmul.f32 0.6931472, %v667_v29 }
 0x123   : > { %v365_v38 = vsel %vm364_vm3, %v362_v34, %v359_v32 }
 0x124   : > { %v669_v35 = vpop.eup %668  ;;  %v375_v43 = vadd.f32 %v365_v38, %v343_v39 }
 0x125   : > { %v368_v36 = vmul.f32 0.6931472, %v669_v35 }
 0x126   : > { %v377_v47 = vsel %vm345_vm6, %v337_v11, %v375_v43 }
 0x127   : > { %v374_v41 = vsel %vm373_vm4, %v371_v37, %v368_v36  ;;  %v558_v50 = vadd.f32 -0.6931472, %v377_v47 }
 0x128   : > { %v376_v42 = vadd.f32 %v374_v41, %v344_v40 }
 0x12a   : > { %v378_v45 = vsel %vm346_vm5, %v340_v16, %v376_v42 }
 0x12b   : > { %v559_v46 = vadd.f32 -0.6931472, %v378_v45 }
 0x12d   : > { %582 = vmatpush3.xpose.msra.mxu1 %v559_v46 }
 0x12e   : > { %583 = vmatprep.subr.mxu1 %v783_v2 }
 0x131   : > { %584 = vmatpush3.xpose.msra.mxu1 %v558_v50 }
 0x134   : > { %586 = vmatmul.mubr.msk.f32.vlgmr.msra.gmra.mxu1 %vm388_vm7, %v786_v51 }
 0x1f4   : > { %v458_v53 = vpop.f32.mrf.mxu1 }
 0x1f5   : > { %v462_v54 = vadd.f32 %v458_v53, %v391_v52 }
 0x1f6   : > { %v587_v55 = vpop.f32.mrf.mxu1 }
 0x1f7   : > { %464 = vst.msk [vmem:[#allocation5] sm:$0x3] %vm463_vm8, %v462_v54 }
 0x1f8   : > { %711 = shalt.err (!%p708_p2)
}
 0x1f9   : > { %591 = dma.vmem_to_hbm [thread:$0]  (%p921_p7), %s475_s24, 32, %s958_s4, [#allocation4]  }
 0x1fa   : > { %751 = dma.done.wait (%p921_p7), [#allocation4], 32  }
 0x1fb   : > { %753 = vsyncadd (%p921_p7), [#allocation4], 4294967264 }
 0x1fc PF: > { %s18_s20 = sadd.s32 1, %s776_s20   ;;  %s963_s15 = smov %s760_s16 }
 0x1fd   : > { %p15_p3 = scmp.ge.s32.totalorder %s18_s20, 5   ;;  %s964_s16 = smov %s764_s17 }
 0x1fe   : > { %s965_s17 = smov %s864_s27  ;;  %s966_s18 = smov %s772_s19 }
 0x1ff   : > { %s967_s19 = smov %s969_s22  ;;  %17 = sbr.rel (!%p15_p3) target bundleno = 5 (0x5), region = 81 }
 0x204   :  { %487 = vsyncpa [#allocation3], 1 }
 0x205   :  { %489 = vsyncpa [#allocation3 + $0x1], 1 }
 0x206   :  { %490 = vsyncpa [#allocation4], 1 }
 0x207   :  { %492 = vsyncpa [#allocation4 + $0x1], 1 }

</bundles_post_ra>
